<compile_context>
chip_gen: v5e
topology: v5e:2x2
jax: 0.10.0
libtpu: 0.0.40
codegen_flags: <defaults>
</compile_context>

<pallas_src>
import jax
import jax.numpy as jnp
from jax.experimental import pallas as pl
from jax.experimental.pallas import tpu as pltpu


_LANE = 128
_SUBLANE = 8


def _round_up(n, m):
    return ((n + m - 1) // m) * m


def _leaky_relu(x, slope=0.2):
    return jnp.where(x > 0, x, slope * x)


def _encoder_kernel(x_ref,
                    w1_ref, b1_ref,
                    w2_ref, b2_ref,
                    w3_ref, b3_ref,
                    wh_ref, bh_ref,
                    out_ref):
    """One batch tile: 3 hidden layers + fused (mean|log_var) head matmul."""
    cdt = w1_ref.dtype                       # MXU operand dtype (bf16 or f32)

    x = x_ref[...].astype(cdt)
    # Layer 1
    h = jnp.dot(x, w1_ref[...], preferred_element_type=jnp.float32)
    h = _leaky_relu(h + b1_ref[...])         # bias (1, H) -> implicit row bcast
    # Layer 2
    h = jnp.dot(h.astype(cdt), w2_ref[...], preferred_element_type=jnp.float32)
    h = _leaky_relu(h + b2_ref[...])
    # Layer 3
    h = jnp.dot(h.astype(cdt), w3_ref[...], preferred_element_type=jnp.float32)
    h = _leaky_relu(h + b3_ref[...])
    # Fused heads: columns [0:L) = mean, [L:2L) = log_var (rest is lane padding)
    out = jnp.dot(h.astype(cdt), wh_ref[...], preferred_element_type=jnp.float32)
    out_ref[...] = (out + bh_ref[...]).astype(out_ref.dtype)


def prepare_params(params, compute_dtype=jnp.bfloat16):
    """One-time conversion of PyTorch-layout params.

    PyTorch Linear stores W as (out, in).  Transpose to (in, out), zero-pad the
    *output* feature dims to multiples of 128 lanes, fuse the mean / log_var
    head weights into one (hidden, 2*latent -> 128) matrix, and store biases as
    (1, N) f32 rows.  Weights are cast to `compute_dtype` (bf16 default: native
    MXU dtype on v5e/v6e/v7x, half the HBM/VMEM traffic); biases stay f32 so
    the elementwise epilogue is exact-f32.
    """
    in_dim = params["w1"].shape[1]
    hid = params["w1"].shape[0]
    lat = params["wm"].shape[0]
    hid_p = _round_up(hid, _LANE)
    out_p = _round_up(2 * lat, _LANE)

    def pad_w(w_t, rows, cols):              # w_t already (in, out)
        return jnp.pad(
            w_t, ((0, rows - w_t.shape[0]), (0, cols - w_t.shape[1]))
        ).astype(compute_dtype)

    def pad_b(b, cols):
        return jnp.pad(b, (0, cols - b.shape[0])).astype(jnp.float32)[None, :]

    w_head = jnp.concatenate([params["wm"].T, params["wv"].T], axis=1)  # (hid, 2L)
    b_head = jnp.concatenate([params["bm"], params["bv"]], axis=0)      # (2L,)

    return dict(
        # W1 keeps in_dim rows so x needs no feature padding at all.
        w1=pad_w(params["w1"].T, in_dim, hid_p), b1=pad_b(params["b1"], hid_p),
        w2=pad_w(params["w2"].T, hid_p, hid_p),  b2=pad_b(params["b2"], hid_p),
        w3=pad_w(params["w3"].T, hid_p, hid_p),  b3=pad_b(params["b3"], hid_p),
        wh=pad_w(w_head, hid_p, out_p),          bh=pad_b(b_head, out_p),
        dims=dict(input_dim=in_dim, hidden_dim=hid, latent_dim=lat,
                  hid_p=hid_p, out_p=out_p),
    )


def encoder_forward(x, prep, *, batch_tile=256):
    """x: (batch, input_dim) float32.  prep: output of prepare_params()."""
    dims = prep["dims"]
    batch, in_dim = x.shape
    assert in_dim == dims["input_dim"]
    lat, hid_p, out_p = dims["latent_dim"], dims["hid_p"], dims["out_p"]

    # ---- batch tiling: balanced tiles, >=2 whenever batch allows (v7x 2 TCs).
    n_tiles = pl.cdiv(batch, batch_tile)
    if batch >= 2 * _SUBLANE:
        n_tiles = max(n_tiles, 2)
    tb = _round_up(pl.cdiv(batch, n_tiles), _SUBLANE)
    if tb >= batch:
        tb = batch                            # full-dim block is always legal
    n_tiles = pl.cdiv(batch, tb)

    weight_args = (prep["w1"], prep["b1"], prep["w2"], prep["b2"],
                   prep["w3"], prep["b3"], prep["wh"], prep["bh"])

    # ---- VMEM budget (resident weights single-buffered + streamed tiles).
    w_bytes = sum(int(a.size) * a.dtype.itemsize for a in weight_args)
    x_tile_bytes = tb * in_dim * 4
    out_tile_bytes = tb * out_p * 4
    interm_bytes = 4 * tb * hid_p * 4 + tb * out_p * 4
    footprint = w_bytes + 2 * (x_tile_bytes + out_tile_bytes) + interm_bytes
    vmem_limit = int(min(max(footprint * 3 // 2, 32 * 2**20), 120 * 2**20))

    # ---- cost estimate (scheduling hint for surrounding XLA ops).
    flops = 2 * batch * (in_dim * hid_p + 2 * hid_p * hid_p + hid_p * out_p)
    bytes_accessed = int(x.size) * 4 + batch * out_p * 4 + w_bytes
    cost = pl.CostEstimate(flops=flops, bytes_accessed=bytes_accessed,
                           transcendentals=0)

    x_spec = pl.BlockSpec((tb, in_dim), lambda i: (i, 0))
    out_spec = pl.BlockSpec((tb, out_p), lambda i: (i, 0))
    out_shape = jax.ShapeDtypeStruct((batch, out_p), jnp.float32)

    def build(single_buffer_consts):
        def const_spec(a):
            # Constant block index -> VMEM-resident; single-buffer it when the
            # running jax supports pipeline_mode (halves resident weight VMEM).
            if single_buffer_consts:
                try:
                    return pl.BlockSpec(a.shape, lambda i: (0,) * a.ndim,
                                        pipeline_mode=pl.Buffered(1))
                except TypeError:
                    pass
            return pl.BlockSpec(a.shape, lambda i: (0,) * a.ndim)

        in_specs = [x_spec] + [const_spec(a) for a in weight_args]
        return pl.pallas_call(
            _encoder_kernel,
            grid=(n_tiles,),
            in_specs=in_specs,
            out_specs=out_spec,
            out_shape=out_shape,
            compiler_params=pltpu.CompilerParams(
                dimension_semantics=("parallel",),   # batch tiles across TCs
                vmem_limit_bytes=vmem_limit),
            cost_estimate=cost,
        )

    try:
        out = build(True)(x, *weight_args)
    except Exception:
        # Fallback: default double-buffered constant specs.
        out = build(False)(x, *weight_args)

    mean = out[:, :lat]
    log_var = out[:, lat:2 * lat]
    return mean, log_var


def init_params(key, input_dim, hidden_dim, latent_dim):
    """Deterministic init matching PyTorch Linear default U(-1/sqrt(fan_in), +)."""
    def linear(k, out_d, in_d):
        kw, kb = jax.random.split(k)
        bound = 1.0 / jnp.sqrt(in_d)
        w = jax.random.uniform(kw, (out_d, in_d), jnp.float32, -bound, bound)
        b = jax.random.uniform(kb, (out_d,), jnp.float32, -bound, bound)
        return w, b

    ks = jax.random.split(key, 5)
    w1, b1 = linear(ks[0], hidden_dim, input_dim)
    w2, b2 = linear(ks[1], hidden_dim, hidden_dim)
    w3, b3 = linear(ks[2], hidden_dim, hidden_dim)
    wm, bm = linear(ks[3], latent_dim, hidden_dim)
    wv, bv = linear(ks[4], latent_dim, hidden_dim)
    return dict(w1=w1, b1=b1, w2=w2, b2=b2, w3=w3, b3=b3,
                wm=wm, bm=bm, wv=wv, bv=bv)


def encoder_ref(x, p):
    """Pure-JAX f32 reference for correctness check."""
    h = jnp.where((t := x @ p["w1"].T + p["b1"]) > 0, t, 0.2 * t)
    h = jnp.where((t := h @ p["w2"].T + p["b2"]) > 0, t, 0.2 * t)
    h = jnp.where((t := h @ p["w3"].T + p["b3"]) > 0, t, 0.2 * t)
    return h @ p["wm"].T + p["bm"], h @ p["wv"].T + p["bv"]


if __name__ == "__main__":
    batch, input_dim, hidden_dim, latent_dim = 8, 16, 32, 8

    key = jax.random.PRNGKey(0)
    kx, kp = jax.random.split(key)
    x = jax.random.normal(kx, (batch, input_dim), jnp.float32)
    params = init_params(kp, input_dim, hidden_dim, latent_dim)

    mean_ref, log_var_ref = encoder_ref(x, params)

    # 1) Exact-semantics check: f32 compute path, tight tolerance.
    prep_f32 = prepare_params(params, compute_dtype=jnp.float32)
    mean32, log_var32 = encoder_forward(x, prep_f32)
    jax.block_until_ready((mean32, log_var32))
    assert mean32.shape == (batch, latent_dim)
    assert log_var32.shape == (batch, latent_dim)
    assert jnp.allclose(mean32, mean_ref, atol=1e-5, rtol=1e-5)
    assert jnp.allclose(log_var32, log_var_ref, atol=1e-5, rtol=1e-5)

    # 2) Default performance path: bf16 MXU operands, f32 accumulate/epilogue.
    prep = prepare_params(params)             # bf16 default
    mean, log_var = encoder_forward(x, prep)
    jax.block_until_ready((mean, log_var))
    assert mean.shape == (batch, latent_dim)
    assert log_var.shape == (batch, latent_dim)
    assert jnp.allclose(mean, mean_ref, atol=5e-2, rtol=5e-2)
    assert jnp.allclose(log_var, log_var_ref, atol=5e-2, rtol=5e-2)

    print("KERNEL_OK")
</pallas_src>

<mosaic_0001>
module attributes {stable_mosaic.version = 11 : i64} {
  func.func @_encoder_kernel(%arg0: i32, %arg1: memref<8x16xf32, #tpu.memory_space<vmem>>, %arg2: memref<16x128xf32, #tpu.memory_space<vmem>>, %arg3: memref<1x128xf32, #tpu.memory_space<vmem>>, %arg4: memref<128x128xf32, #tpu.memory_space<vmem>>, %arg5: memref<1x128xf32, #tpu.memory_space<vmem>>, %arg6: memref<128x128xf32, #tpu.memory_space<vmem>>, %arg7: memref<1x128xf32, #tpu.memory_space<vmem>>, %arg8: memref<128x128xf32, #tpu.memory_space<vmem>>, %arg9: memref<1x128xf32, #tpu.memory_space<vmem>>, %arg10: memref<8x128xf32, #tpu.memory_space<vmem>>) attributes {dimension_semantics = [#tpu.dimension_semantics<parallel>], iteration_bounds = array<i64: 1>, scalar_prefetch = 0 : i64, scratch_operands = 0 : i64, tpu.core_type = #tpu.core_type<tc>, window_params = [{transform_indices = @transform_0, window_bounds = array<i64: 8, 16>}, {pipeline_mode = #tpu.pipeline_mode<synchronous>, transform_indices = @transform_1, window_bounds = array<i64: 16, 128>}, {pipeline_mode = #tpu.pipeline_mode<synchronous>, transform_indices = @transform_2, window_bounds = array<i64: 1, 128>}, {pipeline_mode = #tpu.pipeline_mode<synchronous>, transform_indices = @transform_3, window_bounds = array<i64: 128, 128>}, {pipeline_mode = #tpu.pipeline_mode<synchronous>, transform_indices = @transform_4, window_bounds = array<i64: 1, 128>}, {pipeline_mode = #tpu.pipeline_mode<synchronous>, transform_indices = @transform_5, window_bounds = array<i64: 128, 128>}, {pipeline_mode = #tpu.pipeline_mode<synchronous>, transform_indices = @transform_6, window_bounds = array<i64: 1, 128>}, {pipeline_mode = #tpu.pipeline_mode<synchronous>, transform_indices = @transform_7, window_bounds = array<i64: 128, 128>}, {pipeline_mode = #tpu.pipeline_mode<synchronous>, transform_indices = @transform_8, window_bounds = array<i64: 1, 128>}, {transform_indices = @transform_9, window_bounds = array<i64: 8, 128>}]} {
    %c0 = arith.constant 0 : index
    %c0_0 = arith.constant 0 : index
    %0 = vector.load %arg1[%c0, %c0_0] : memref<8x16xf32, #tpu.memory_space<vmem>>, vector<8x16xf32>
    %c0_1 = arith.constant 0 : index
    %c0_2 = arith.constant 0 : index
    %1 = vector.load %arg2[%c0_1, %c0_2] : memref<16x128xf32, #tpu.memory_space<vmem>>, vector<16x128xf32>
    %cst = arith.constant dense<0.000000e+00> : vector<8x128xf32>
    %2 = tpu.matmul %0, %1, %cst {dimension_numbers = #tpu.dot_dimension_numbers<[1], [0], [0], [1], [0, 0, 1, 1], [], []>} : vector<8x16xf32>, vector<16x128xf32>, vector<8x128xf32> -> vector<8x128xf32>
    %c0_3 = arith.constant 0 : index
    %c0_4 = arith.constant 0 : index
    %3 = vector.load %arg3[%c0_3, %c0_4] : memref<1x128xf32, #tpu.memory_space<vmem>>, vector<1x128xf32>
    %4 = vector.broadcast %3 : vector<1x128xf32> to vector<8x128xf32>
    %5 = arith.addf %2, %4 : vector<8x128xf32>
    %cst_5 = arith.constant 0.000000e+00 : f32
    %6 = vector.broadcast %cst_5 : f32 to vector<8x128xf32>
    %7 = arith.cmpf ogt, %5, %6 : vector<8x128xf32>
    %cst_6 = arith.constant 2.000000e-01 : f32
    %8 = vector.broadcast %cst_6 : f32 to vector<8x128xf32>
    %9 = arith.mulf %8, %5 : vector<8x128xf32>
    %10 = arith.select %7, %5, %9 : vector<8x128xi1>, vector<8x128xf32>
    %c0_7 = arith.constant 0 : index
    %c0_8 = arith.constant 0 : index
    %11 = vector.load %arg4[%c0_7, %c0_8] : memref<128x128xf32, #tpu.memory_space<vmem>>, vector<128x128xf32>
    %cst_9 = arith.constant dense<0.000000e+00> : vector<8x128xf32>
    %12 = tpu.matmul %10, %11, %cst_9 {dimension_numbers = #tpu.dot_dimension_numbers<[1], [0], [0], [1], [0, 0, 1, 1], [], []>} : vector<8x128xf32>, vector<128x128xf32>, vector<8x128xf32> -> vector<8x128xf32>
    %c0_10 = arith.constant 0 : index
    %c0_11 = arith.constant 0 : index
    %13 = vector.load %arg5[%c0_10, %c0_11] : memref<1x128xf32, #tpu.memory_space<vmem>>, vector<1x128xf32>
    %14 = vector.broadcast %13 : vector<1x128xf32> to vector<8x128xf32>
    %15 = arith.addf %12, %14 : vector<8x128xf32>
    %cst_12 = arith.constant 0.000000e+00 : f32
    %16 = vector.broadcast %cst_12 : f32 to vector<8x128xf32>
    %17 = arith.cmpf ogt, %15, %16 : vector<8x128xf32>
    %cst_13 = arith.constant 2.000000e-01 : f32
    %18 = vector.broadcast %cst_13 : f32 to vector<8x128xf32>
    %19 = arith.mulf %18, %15 : vector<8x128xf32>
    %20 = arith.select %17, %15, %19 : vector<8x128xi1>, vector<8x128xf32>
    %c0_14 = arith.constant 0 : index
    %c0_15 = arith.constant 0 : index
    %21 = vector.load %arg6[%c0_14, %c0_15] : memref<128x128xf32, #tpu.memory_space<vmem>>, vector<128x128xf32>
    %cst_16 = arith.constant dense<0.000000e+00> : vector<8x128xf32>
    %22 = tpu.matmul %20, %21, %cst_16 {dimension_numbers = #tpu.dot_dimension_numbers<[1], [0], [0], [1], [0, 0, 1, 1], [], []>} : vector<8x128xf32>, vector<128x128xf32>, vector<8x128xf32> -> vector<8x128xf32>
    %c0_17 = arith.constant 0 : index
    %c0_18 = arith.constant 0 : index
    %23 = vector.load %arg7[%c0_17, %c0_18] : memref<1x128xf32, #tpu.memory_space<vmem>>, vector<1x128xf32>
    %24 = vector.broadcast %23 : vector<1x128xf32> to vector<8x128xf32>
    %25 = arith.addf %22, %24 : vector<8x128xf32>
    %cst_19 = arith.constant 0.000000e+00 : f32
    %26 = vector.broadcast %cst_19 : f32 to vector<8x128xf32>
    %27 = arith.cmpf ogt, %25, %26 : vector<8x128xf32>
    %cst_20 = arith.constant 2.000000e-01 : f32
    %28 = vector.broadcast %cst_20 : f32 to vector<8x128xf32>
    %29 = arith.mulf %28, %25 : vector<8x128xf32>
    %30 = arith.select %27, %25, %29 : vector<8x128xi1>, vector<8x128xf32>
    %c0_21 = arith.constant 0 : index
    %c0_22 = arith.constant 0 : index
    %31 = vector.load %arg8[%c0_21, %c0_22] : memref<128x128xf32, #tpu.memory_space<vmem>>, vector<128x128xf32>
    %cst_23 = arith.constant dense<0.000000e+00> : vector<8x128xf32>
    %32 = tpu.matmul %30, %31, %cst_23 {dimension_numbers = #tpu.dot_dimension_numbers<[1], [0], [0], [1], [0, 0, 1, 1], [], []>} : vector<8x128xf32>, vector<128x128xf32>, vector<8x128xf32> -> vector<8x128xf32>
    %c0_24 = arith.constant 0 : index
    %c0_25 = arith.constant 0 : index
    %33 = vector.load %arg9[%c0_24, %c0_25] : memref<1x128xf32, #tpu.memory_space<vmem>>, vector<1x128xf32>
    %34 = vector.broadcast %33 : vector<1x128xf32> to vector<8x128xf32>
    %35 = arith.addf %32, %34 : vector<8x128xf32>
    %c0_26 = arith.constant 0 : index
    %c0_27 = arith.constant 0 : index
    %36 = vector.load %arg10[%c0_26, %c0_27] : memref<8x128xf32, #tpu.memory_space<vmem>>, vector<8x128xf32>
    tpu.vector_store %arg10[%c0_26, %c0_27], %35 {strides = array<i32>} : memref<8x128xf32, #tpu.memory_space<vmem>>, vector<8x128xf32>,
    return
  }
  func.func @transform_0(%arg0: i32) -> (i32, i32) {
    %c0_i32 = arith.constant 0 : i32
    %c0_i32_0 = arith.constant 0 : i32
    return %arg0, %c0_i32 : i32, i32
  }
  func.func @transform_1(%arg0: i32) -> (i32, i32) {
    %c0_i32 = arith.constant 0 : i32
    %c0_i32_0 = arith.constant 0 : i32
    %c0_i32_1 = arith.constant 0 : i32
    return %c0_i32, %c0_i32_0 : i32, i32
  }
  func.func @transform_2(%arg0: i32) -> (i32, i32) {
    %c0_i32 = arith.constant 0 : i32
    %c0_i32_0 = arith.constant 0 : i32
    %c0_i32_1 = arith.constant 0 : i32
    return %c0_i32, %c0_i32_0 : i32, i32
  }
  func.func @transform_3(%arg0: i32) -> (i32, i32) {
    %c0_i32 = arith.constant 0 : i32
    %c0_i32_0 = arith.constant 0 : i32
    %c0_i32_1 = arith.constant 0 : i32
    return %c0_i32, %c0_i32_0 : i32, i32
  }
  func.func @transform_4(%arg0: i32) -> (i32, i32) {
    %c0_i32 = arith.constant 0 : i32
    %c0_i32_0 = arith.constant 0 : i32
    %c0_i32_1 = arith.constant 0 : i32
    return %c0_i32, %c0_i32_0 : i32, i32
  }
  func.func @transform_5(%arg0: i32) -> (i32, i32) {
    %c0_i32 = arith.constant 0 : i32
    %c0_i32_0 = arith.constant 0 : i32
    %c0_i32_1 = arith.constant 0 : i32
    return %c0_i32, %c0_i32_0 : i32, i32
  }
  func.func @transform_6(%arg0: i32) -> (i32, i32) {
    %c0_i32 = arith.constant 0 : i32
    %c0_i32_0 = arith.constant 0 : i32
    %c0_i32_1 = arith.constant 0 : i32
    return %c0_i32, %c0_i32_0 : i32, i32
  }
  func.func @transform_7(%arg0: i32) -> (i32, i32) {
    %c0_i32 = arith.constant 0 : i32
    %c0_i32_0 = arith.constant 0 : i32
    %c0_i32_1 = arith.constant 0 : i32
    return %c0_i32, %c0_i32_0 : i32, i32
  }
  func.func @transform_8(%arg0: i32) -> (i32, i32) {
    %c0_i32 = arith.constant 0 : i32
    %c0_i32_0 = arith.constant 0 : i32
    %c0_i32_1 = arith.constant 0 : i32
    return %c0_i32, %c0_i32_0 : i32, i32
  }
  func.func @transform_9(%arg0: i32) -> (i32, i32) {
    %c0_i32 = arith.constant 0 : i32
    %c0_i32_0 = arith.constant 0 : i32
    return %arg0, %c0_i32 : i32, i32
  }
}

module attributes {stable_mosaic.version = 11 : i64} {
  func.func @_encoder_kernel(%arg0: i32, %arg1: memref<8x16xf32, #tpu.memory_space<vmem>>, %arg2: memref<16x128xf32, #tpu.memory_space<vmem>>, %arg3: memref<1x128xf32, #tpu.memory_space<vmem>>, %arg4: memref<128x128xf32, #tpu.memory_space<vmem>>, %arg5: memref<1x128xf32, #tpu.memory_space<vmem>>, %arg6: memref<128x128xf32, #tpu.memory_space<vmem>>, %arg7: memref<1x128xf32, #tpu.memory_space<vmem>>, %arg8: memref<128x128xf32, #tpu.memory_space<vmem>>, %arg9: memref<1x128xf32, #tpu.memory_space<vmem>>, %arg10: memref<8x128xf32, #tpu.memory_space<vmem>>) attributes {dimension_semantics = [#tpu.dimension_semantics<parallel>], iteration_bounds = array<i64: 1>, scalar_prefetch = 0 : i64, scratch_operands = 0 : i64, tpu.core_type = #tpu.core_type<tc>, window_params = [{transform_indices = @transform_0, window_bounds = array<i64: 8, 16>}, {pipeline_mode = #tpu.pipeline_mode<synchronous>, transform_indices = @transform_1, window_bounds = array<i64: 16, 128>}, {pipeline_mode = #tpu.pipeline_mode<synchronous>, transform_indices = @transform_2, window_bounds = array<i64: 1, 128>}, {pipeline_mode = #tpu.pipeline_mode<synchronous>, transform_indices = @transform_3, window_bounds = array<i64: 128, 128>}, {pipeline_mode = #tpu.pipeline_mode<synchronous>, transform_indices = @transform_4, window_bounds = array<i64: 1, 128>}, {pipeline_mode = #tpu.pipeline_mode<synchronous>, transform_indices = @transform_5, window_bounds = array<i64: 128, 128>}, {pipeline_mode = #tpu.pipeline_mode<synchronous>, transform_indices = @transform_6, window_bounds = array<i64: 1, 128>}, {pipeline_mode = #tpu.pipeline_mode<synchronous>, transform_indices = @transform_7, window_bounds = array<i64: 128, 128>}, {pipeline_mode = #tpu.pipeline_mode<synchronous>, transform_indices = @transform_8, window_bounds = array<i64: 1, 128>}, {transform_indices = @transform_9, window_bounds = array<i64: 8, 128>}]} {
    %c0 = arith.constant 0 : index
    %c0_0 = arith.constant 0 : index
    %0 = vector.load %arg1[%c0, %c0_0] : memref<8x16xf32, #tpu.memory_space<vmem>>, vector<8x16xf32>
    %c0_1 = arith.constant 0 : index
    %c0_2 = arith.constant 0 : index
    %1 = vector.load %arg2[%c0_1, %c0_2] : memref<16x128xf32, #tpu.memory_space<vmem>>, vector<16x128xf32>
    %cst = arith.constant dense<0.000000e+00> : vector<8x128xf32>
    %2 = tpu.matmul %0, %1, %cst {dimension_numbers = #tpu.dot_dimension_numbers<[1], [0], [0], [1], [0, 0, 1, 1], [], []>} : vector<8x16xf32>, vector<16x128xf32>, vector<8x128xf32> -> vector<8x128xf32>
    %c0_3 = arith.constant 0 : index
    %c0_4 = arith.constant 0 : index
    %3 = vector.load %arg3[%c0_3, %c0_4] : memref<1x128xf32, #tpu.memory_space<vmem>>, vector<1x128xf32>
    %4 = vector.broadcast %3 : vector<1x128xf32> to vector<8x128xf32>
    %5 = arith.addf %2, %4 : vector<8x128xf32>
    %cst_5 = arith.constant 0.000000e+00 : f32
    %6 = vector.broadcast %cst_5 : f32 to vector<8x128xf32>
    %7 = arith.cmpf ogt, %5, %6 : vector<8x128xf32>
    %cst_6 = arith.constant 2.000000e-01 : f32
    %8 = vector.broadcast %cst_6 : f32 to vector<8x128xf32>
    %9 = arith.mulf %8, %5 : vector<8x128xf32>
    %10 = arith.select %7, %5, %9 : vector<8x128xi1>, vector<8x128xf32>
    %c0_7 = arith.constant 0 : index
    %c0_8 = arith.constant 0 : index
    %11 = vector.load %arg4[%c0_7, %c0_8] : memref<128x128xf32, #tpu.memory_space<vmem>>, vector<128x128xf32>
    %cst_9 = arith.constant dense<0.000000e+00> : vector<8x128xf32>
    %12 = tpu.matmul %10, %11, %cst_9 {dimension_numbers = #tpu.dot_dimension_numbers<[1], [0], [0], [1], [0, 0, 1, 1], [], []>} : vector<8x128xf32>, vector<128x128xf32>, vector<8x128xf32> -> vector<8x128xf32>
    %c0_10 = arith.constant 0 : index
    %c0_11 = arith.constant 0 : index
    %13 = vector.load %arg5[%c0_10, %c0_11] : memref<1x128xf32, #tpu.memory_space<vmem>>, vector<1x128xf32>
    %14 = vector.broadcast %13 : vector<1x128xf32> to vector<8x128xf32>
    %15 = arith.addf %12, %14 : vector<8x128xf32>
    %cst_12 = arith.constant 0.000000e+00 : f32
    %16 = vector.broadcast %cst_12 : f32 to vector<8x128xf32>
    %17 = arith.cmpf ogt, %15, %16 : vector<8x128xf32>
    %cst_13 = arith.constant 2.000000e-01 : f32
    %18 = vector.broadcast %cst_13 : f32 to vector<8x128xf32>
    %19 = arith.mulf %18, %15 : vector<8x128xf32>
    %20 = arith.select %17, %15, %19 : vector<8x128xi1>, vector<8x128xf32>
    %c0_14 = arith.constant 0 : index
    %c0_15 = arith.constant 0 : index
    %21 = vector.load %arg6[%c0_14, %c0_15] : memref<128x128xf32, #tpu.memory_space<vmem>>, vector<128x128xf32>
    %cst_16 = arith.constant dense<0.000000e+00> : vector<8x128xf32>
    %22 = tpu.matmul %20, %21, %cst_16 {dimension_numbers = #tpu.dot_dimension_numbers<[1], [0], [0], [1], [0, 0, 1, 1], [], []>} : vector<8x128xf32>, vector<128x128xf32>, vector<8x128xf32> -> vector<8x128xf32>
    %c0_17 = arith.constant 0 : index
    %c0_18 = arith.constant 0 : index
    %23 = vector.load %arg7[%c0_17, %c0_18] : memref<1x128xf32, #tpu.memory_space<vmem>>, vector<1x128xf32>
    %24 = vector.broadcast %23 : vector<1x128xf32> to vector<8x128xf32>
    %25 = arith.addf %22, %24 : vector<8x128xf32>
    %cst_19 = arith.constant 0.000000e+00 : f32
    %26 = vector.broadcast %cst_19 : f32 to vector<8x128xf32>
    %27 = arith.cmpf ogt, %25, %26 : vector<8x128xf32>
    %cst_20 = arith.constant 2.000000e-01 : f32
    %28 = vector.broadcast %cst_20 : f32 to vector<8x128xf32>
    %29 = arith.mulf %28, %25 : vector<8x128xf32>
    %30 = arith.select %27, %25, %29 : vector<8x128xi1>, vector<8x128xf32>
    %c0_21 = arith.constant 0 : index
    %c0_22 = arith.constant 0 : index
    %31 = vector.load %arg8[%c0_21, %c0_22] : memref<128x128xf32, #tpu.memory_space<vmem>>, vector<128x128xf32>
    %cst_23 = arith.constant dense<0.000000e+00> : vector<8x128xf32>
    %32 = tpu.matmul %30, %31, %cst_23 {dimension_numbers = #tpu.dot_dimension_numbers<[1], [0], [0], [1], [0, 0, 1, 1], [], []>} : vector<8x128xf32>, vector<128x128xf32>, vector<8x128xf32> -> vector<8x128xf32>
    %c0_24 = arith.constant 0 : index
    %c0_25 = arith.constant 0 : index
    %33 = vector.load %arg9[%c0_24, %c0_25] : memref<1x128xf32, #tpu.memory_space<vmem>>, vector<1x128xf32>
    %34 = vector.broadcast %33 : vector<1x128xf32> to vector<8x128xf32>
    %35 = arith.addf %32, %34 : vector<8x128xf32>
    %c0_26 = arith.constant 0 : index
    %c0_27 = arith.constant 0 : index
    %36 = vector.load %arg10[%c0_26, %c0_27] : memref<8x128xf32, #tpu.memory_space<vmem>>, vector<8x128xf32>
    tpu.vector_store %arg10[%c0_26, %c0_27], %35 {strides = array<i32>} : memref<8x128xf32, #tpu.memory_space<vmem>>, vector<8x128xf32>,
    return
  }
  func.func @transform_0(%arg0: i32) -> (i32, i32) {
    %c0_i32 = arith.constant 0 : i32
    %c0_i32_0 = arith.constant 0 : i32
    return %arg0, %c0_i32 : i32, i32
  }
  func.func @transform_1(%arg0: i32) -> (i32, i32) {
    %c0_i32 = arith.constant 0 : i32
    %c0_i32_0 = arith.constant 0 : i32
    %c0_i32_1 = arith.constant 0 : i32
    return %c0_i32, %c0_i32_0 : i32, i32
  }
  func.func @transform_2(%arg0: i32) -> (i32, i32) {
    %c0_i32 = arith.constant 0 : i32
    %c0_i32_0 = arith.constant 0 : i32
    %c0_i32_1 = arith.constant 0 : i32
    return %c0_i32, %c0_i32_0 : i32, i32
  }
  func.func @transform_3(%arg0: i32) -> (i32, i32) {
    %c0_i32 = arith.constant 0 : i32
    %c0_i32_0 = arith.constant 0 : i32
    %c0_i32_1 = arith.constant 0 : i32
    return %c0_i32, %c0_i32_0 : i32, i32
  }
  func.func @transform_4(%arg0: i32) -> (i32, i32) {
    %c0_i32 = arith.constant 0 : i32
    %c0_i32_0 = arith.constant 0 : i32
    %c0_i32_1 = arith.constant 0 : i32
    return %c0_i32, %c0_i32_0 : i32, i32
  }
  func.func @transform_5(%arg0: i32) -> (i32, i32) {
    %c0_i32 = arith.constant 0 : i32
    %c0_i32_0 = arith.constant 0 : i32
    %c0_i32_1 = arith.constant 0 : i32
    return %c0_i32, %c0_i32_0 : i32, i32
  }
  func.func @transform_6(%arg0: i32) -> (i32, i32) {
    %c0_i32 = arith.constant 0 : i32
    %c0_i32_0 = arith.constant 0 : i32
    %c0_i32_1 = arith.constant 0 : i32
    return %c0_i32, %c0_i32_0 : i32, i32
  }
  func.func @transform_7(%arg0: i32) -> (i32, i32) {
    %c0_i32 = arith.constant 0 : i32
    %c0_i32_0 = arith.constant 0 : i32
    %c0_i32_1 = arith.constant 0 : i32
    return %c0_i32, %c0_i32_0 : i32, i32
  }
  func.func @transform_8(%arg0: i32) -> (i32, i32) {
    %c0_i32 = arith.constant 0 : i32
    %c0_i32_0 = arith.constant 0 : i32
    %c0_i32_1 = arith.constant 0 : i32
    return %c0_i32, %c0_i32_0 : i32, i32
  }
  func.func @transform_9(%arg0: i32) -> (i32, i32) {
    %c0_i32 = arith.constant 0 : i32
    %c0_i32_0 = arith.constant 0 : i32
    return %arg0, %c0_i32 : i32, i32
  }
}

</mosaic_0001>

<bundles_post_ra>
// kernel: tpu_custom_call.1
= control target key start
LH: loop header
LB: loop body
LE: loop exit
PB: predicated region body
PF: predicated region fallthrough
CT: control target
= control target key end

     0   :  { %14 = vsyncpa [#allocation3], 0  ;;  %s542_s0 = inlined_call_operand.hbm [shape: f32[8,16], index: 0, kind: input, shape index: {}]   ;;  %s543_s1 = inlined_call_operand.hbm [shape: f32[16,128], index: 1, kind: input, shape index: {}]   ;;  %s544_s2 = inlined_call_operand.vmem [shape: f32[1,128], index: 2, kind: input, shape index: {}]   ;;  %s545_s3 = inlined_call_operand.hbm [shape: f32[128,128], index: 3, kind: input, shape index: {}]   ;;  %s546_s4 = inlined_call_operand.vmem [shape: f32[1,128], index: 4, kind: input, shape index: {}]   ;;  %s547_s5 = inlined_call_operand.hbm [shape: f32[128,128], index: 5, kind: input, shape index: {}]   ;;  %s548_s6 = inlined_call_operand.vmem [shape: f32[1,128], index: 6, kind: input, shape index: {}]   ;;  %s549_s7 = inlined_call_operand.hbm [shape: f32[128,128], index: 7, kind: input, shape index: {}]   ;;  %s550_s8 = inlined_call_operand.vmem [shape: f32[1,128], index: 8, kind: input, shape index: {}]   ;;  %s551_s9 = inlined_call_operand.hbm [shape: f32[8,128], index: 9, kind: output, shape index: {}]  }
   0x1   :  { %15 = vsyncpa [#allocation6], 0 }
   0x2   :  { %16 = vsyncpa [#allocation9], 0  ;;  %s33_s11 = sshll.u32 %s543_s1, 4  ;;  %s34_s11 = int_to_ptr.hbm [resolvable:$true] %s33_s11 }
   0x3   :  { %17 = vsyncpa [#allocation4], 0  ;;  %s454_s12 = smov [#allocation5]   ;;  %s63_s16 = sshll.u32 %s547_s5, 4  ;;  %s64_s16 = int_to_ptr.hbm [resolvable:$true] %s63_s16 }
   0x4   :  { %s35_s13 = sshll.u32 %s454_s12, 4  ;;  %s455_s17 = smov 128   ;;  %s36_s13 = int_to_ptr.vmem [resolvable:$true] %s35_s13 }
   0x5   :  { %s456_s18 = smov 8   ;;  %s457_s19 = smov [#allocation8]  }
   0x6   :  { %41 = dma.hbm_to_vmem [thread:$0]  %s34_s11, 256, %s36_s13, [#allocation6], %s455_s17, %s455_s17, %s456_s18  }
   0x7   :  { %s65_s20 = sshll.u32 %s457_s19, 4  ;;  %s23_s23 = sshll.u32 %s542_s0, 4  ;;  %s66_s20 = int_to_ptr.vmem [resolvable:$true] %s65_s20  ;;  %s24_s23 = int_to_ptr.hbm [resolvable:$true] %s23_s23 }
   0x8   :  { %71 = dma.hbm_to_vmem [thread:$0]  %s64_s16, 2048, %s66_s20, [#allocation9], %s455_s17, %s455_s17, %s456_s18  }
   0x9   :  { %s48_s25 = sshll.u32 %s545_s3, 4  ;;  %s458_s26 = smov [#allocation2]   ;;  %s49_s25 = int_to_ptr.hbm [resolvable:$true] %s48_s25 }
   0xa   :  { %s25_s27 = sshll.u32 %s458_s26, 4  ;;  %s459_s5 = smov [#allocation7]   ;;  %s26_s27 = int_to_ptr.vmem [resolvable:$true] %s25_s27 }
   0xb   :  { %28 = dma.hbm_to_vmem [thread:$0]  %s24_s23, 128, %s26_s27, [#allocation3]  }
   0xc   :  { %s50_s28 = sshll.u32 %s459_s5, 4  ;;  %s78_s10 = sshll.u32 %s549_s7, 4  ;;  %s51_s28 = int_to_ptr.vmem [resolvable:$true] %s50_s28  ;;  %s79_s10 = int_to_ptr.hbm [resolvable:$true] %s78_s10 }
   0xd   :  { %56 = dma.hbm_to_vmem [thread:$0]  %s49_s25, 2048, %s51_s28, [#allocation6], %s455_s17, %s455_s17, %s456_s18  }
   0xe   :  { %s460_s0 = smov [#allocation10]  }
   0xf   :  { %s80_s11 = sshll.u32 %s460_s0, 4  ;;  %s81_s11 = int_to_ptr.vmem [resolvable:$true] %s80_s11 }
  0x10   :  { %86 = dma.hbm_to_vmem [thread:$0]  %s79_s10, 2048, %s81_s11, [#allocation9], %s455_s17, %s455_s17, %s456_s18  }
  0x11   :  { %446 = dma.done.wait [#allocation3], 128  }
  0x12   :  { %447 = vsyncadd [#allocation3], 4294967168 }
  0x13   :  { %448 = dma.done.wait [#allocation6], 2304  }
  0x14   :  { %449 = vsyncadd [#allocation6], 4294964992 }
  0x15   :  { %450 = dma.done.wait [#allocation9], 4096  }
  0x16   :  { %451 = vsyncadd [#allocation9], 4294963200  ;;  %v111_v0 = vld [vmem:[#allocation5 + $0x8] sm:$0xff]  ;;  %v110_v1 = vld [vmem:[#allocation5] sm:$0xff]  ;;  %vm116_vm0 = vcmask 130048   ;;  %s461_s16 = smov [#allocation11]  }
  0x17   :  { %134 = vmatpush.msra.mxu0 %v111_v0  ;;  %v109_v2 = vld [vmem:[#allocation2] sm:$0xff]  ;;  %v158_v3 = vld [vmem:[#allocation7 + $0x78] sm:$0xff]  ;;  %v157_v4 = vld [vmem:[#allocation7 + $0x70] sm:$0xff]  ;;  %s275_s17 = sshll.u32 %s461_s16, 4  ;;  %s277_s20 = sshll.u32 %s551_s9, 4  ;;  %s276_s17 = int_to_ptr.vmem [resolvable:$true] %s275_s17  ;;  %s278_s20 = int_to_ptr.hbm [resolvable:$true] %s277_s20 }
  0x18   :  { %163 = vmatpush.msra.mxu1 %v158_v3  ;;  %v156_v5 = vld [vmem:[#allocation7 + $0x68] sm:$0xff]  ;;  %v155_v6 = vld [vmem:[#allocation7 + $0x60] sm:$0xff]  ;;  %v154_v7 = vld [vmem:[#allocation7 + $0x58] sm:$0xff] }
  0x19   :  { %135 = vmatpush.msra.mxu0 %v110_v1  ;;  %v153_v8 = vld [vmem:[#allocation7 + $0x50] sm:$0xff]  ;;  %v152_v9 = vld [vmem:[#allocation7 + $0x48] sm:$0xff]  ;;  %v151_v10 = vld [vmem:[#allocation7 + $0x40] sm:$0xff] }
  0x1a   :  { %289 = vmatmul.msk.f32.vlgmr.msra.gmra.mxu0 %vm116_vm0, %v109_v2  ;;  %164 = vmatpush.msra.mxu1 %v157_v4  ;;  %v150_v11 = vld [vmem:[#allocation7 + $0x38] sm:$0xff]  ;;  %v149_v12 = vld [vmem:[#allocation7 + $0x30] sm:$0xff]  ;;  %v148_v13 = vld [vmem:[#allocation7 + $0x28] sm:$0xff] }
  0x1b   :  { %v147_v14 = vld [vmem:[#allocation7 + $0x20] sm:$0xff]  ;;  %v146_v15 = vld [vmem:[#allocation7 + $0x18] sm:$0xff]  ;;  %v145_v16 = vld [vmem:[#allocation7 + $0x10] sm:$0xff] }
  0x1c   :  { %165 = vmatpush.msra.mxu1 %v156_v5  ;;  %v144_v17 = vld [vmem:[#allocation7 + $0x8] sm:$0xff]  ;;  %v143_v18 = vld [vmem:[#allocation7] sm:$0xff]  ;;  %v201_v19 = vld [vmem:[#allocation8 + $0x78] sm:$0xff] }
  0x1d   :  { %v200_v20 = vld [vmem:[#allocation8 + $0x70] sm:$0xff]  ;;  %206 = vmatpush.msra.mxu2 %v201_v19  ;;  %v199_v21 = vld [vmem:[#allocation8 + $0x68] sm:$0xff]  ;;  %v198_v22 = vld [vmem:[#allocation8 + $0x60] sm:$0xff] }
  0x1e   :  { %166 = vmatpush.msra.mxu1 %v155_v6  ;;  %v197_v23 = vld [vmem:[#allocation8 + $0x58] sm:$0xff]  ;;  %v196_v24 = vld [vmem:[#allocation8 + $0x50] sm:$0xff]  ;;  %v195_v25 = vld [vmem:[#allocation8 + $0x48] sm:$0xff] }
  0x1f   :  { %207 = vmatpush.msra.mxu2 %v200_v20  ;;  %v194_v26 = vld [vmem:[#allocation8 + $0x40] sm:$0xff]  ;;  %v193_v27 = vld [vmem:[#allocation8 + $0x38] sm:$0xff]  ;;  %v192_v28 = vld [vmem:[#allocation8 + $0x30] sm:$0xff] }
  0x20   :  { %167 = vmatpush.msra.mxu1 %v154_v7  ;;  %v191_v29 = vld [vmem:[#allocation8 + $0x28] sm:$0xff]  ;;  %v190_v30 = vld [vmem:[#allocation8 + $0x20] sm:$0xff]  ;;  %v189_v31 = vld [vmem:[#allocation8 + $0x18] sm:$0xff] }
  0x21   :  { %208 = vmatpush.msra.mxu2 %v199_v21  ;;  %v298_v32 = vld [vmem:[%s544_s2] ss:$0 sm:$0xff]  ;;  %v188_v37 = vld [vmem:[#allocation8 + $0x10] sm:$0xff]  ;;  %v186_v39 = vld [vmem:[#allocation8] sm:$0xff] }
  0x22   :  { %168 = vmatpush.msra.mxu1 %v153_v8  ;;  %v187_v38 = vld [vmem:[#allocation8 + $0x8] sm:$0xff]  ;;  %v244_v40 = vld [vmem:[#allocation10 + $0x78] sm:$0xff]  ;;  %v243_v41 = vld [vmem:[#allocation10 + $0x70] sm:$0xff] }
  0x23   :  { %209 = vmatpush.msra.mxu2 %v198_v22  ;;  %249 = vmatpush.msra.mxu3 %v244_v40  ;;  %v242_v42 = vld [vmem:[#allocation10 + $0x68] sm:$0xff]  ;;  %v241_v43 = vld [vmem:[#allocation10 + $0x60] sm:$0xff]  ;;  %v240_v44 = vld [vmem:[#allocation10 + $0x58] sm:$0xff] }
  0x24   :  { %169 = vmatpush.msra.mxu1 %v152_v9  ;;  %v239_v45 = vld [vmem:[#allocation10 + $0x50] sm:$0xff]  ;;  %v238_v46 = vld [vmem:[#allocation10 + $0x48] sm:$0xff]  ;;  %v237_v47 = vld [vmem:[#allocation10 + $0x40] sm:$0xff] }
  0x25   :  { %210 = vmatpush.msra.mxu2 %v197_v23  ;;  %250 = vmatpush.msra.mxu3 %v243_v41  ;;  %v236_v48 = vld [vmem:[#allocation10 + $0x38] sm:$0xff]  ;;  %v235_v49 = vld [vmem:[#allocation10 + $0x30] sm:$0xff]  ;;  %v234_v50 = vld [vmem:[#allocation10 + $0x28] sm:$0xff] }
  0x26   :  { %170 = vmatpush.msra.mxu1 %v151_v10  ;;  %v233_v51 = vld [vmem:[#allocation10 + $0x20] sm:$0xff]  ;;  %v232_v52 = vld [vmem:[#allocation10 + $0x18] sm:$0xff]  ;;  %v299_v53 = vld [vmem:[%s546_s4] ss:$0 sm:$0xff] }
  0x27   :  { %211 = vmatpush.msra.mxu2 %v196_v24  ;;  %251 = vmatpush.msra.mxu3 %v242_v42  ;;  %v231_v58 = vld [vmem:[#allocation10 + $0x10] sm:$0xff]  ;;  %v230_v59 = vld [vmem:[#allocation10 + $0x8] sm:$0xff]  ;;  %v229_v60 = vld [vmem:[#allocation10] sm:$0xff] }
  0x28   :  { %171 = vmatpush.msra.mxu1 %v150_v11  ;;  %v300_v61 = vld [vmem:[%s548_s6] ss:$0 sm:$0xff] }
  0x29   :  { %212 = vmatpush.msra.mxu2 %v195_v25  ;;  %252 = vmatpush.msra.mxu3 %v241_v43  ;;  %v301_v2 = vld [vmem:[%s550_s8] ss:$0 sm:$0xff] }
  0x2a   :  { %172 = vmatpush.msra.mxu1 %v149_v12 }
  0x2b   :  { %213 = vmatpush.msra.mxu2 %v194_v26  ;;  %253 = vmatpush.msra.mxu3 %v240_v44 }
  0x2c   :  { %173 = vmatpush.msra.mxu1 %v148_v13 }
  0x2d   :  { %214 = vmatpush.msra.mxu2 %v193_v27  ;;  %254 = vmatpush.msra.mxu3 %v239_v45 }
  0x2e   :  { %174 = vmatpush.msra.mxu1 %v147_v14 }
  0x2f   :  { %215 = vmatpush.msra.mxu2 %v192_v28  ;;  %255 = vmatpush.msra.mxu3 %v238_v46 }
  0x30   :  { %175 = vmatpush.msra.mxu1 %v146_v15 }
  0x31   :  { %216 = vmatpush.msra.mxu2 %v191_v29  ;;  %256 = vmatpush.msra.mxu3 %v237_v47 }
  0x32   :  { %176 = vmatpush.msra.mxu1 %v145_v16 }
  0x33   :  { %217 = vmatpush.msra.mxu2 %v190_v30  ;;  %257 = vmatpush.msra.mxu3 %v236_v48 }
  0x34   :  { %177 = vmatpush.msra.mxu1 %v144_v17 }
  0x35   :  { %218 = vmatpush.msra.mxu2 %v189_v31  ;;  %258 = vmatpush.msra.mxu3 %v235_v49 }
  0x36   :  { %178 = vmatpush.msra.mxu1 %v143_v18 }
  0x37   :  { %219 = vmatpush.msra.mxu2 %v188_v37  ;;  %259 = vmatpush.msra.mxu3 %v234_v50 }
  0x39   :  { %220 = vmatpush.msra.mxu2 %v187_v38  ;;  %260 = vmatpush.msra.mxu3 %v233_v51 }
  0x3b   :  { %221 = vmatpush.msra.mxu2 %v186_v39  ;;  %261 = vmatpush.msra.mxu3 %v232_v52 }
  0x3d   :  { %262 = vmatpush.msra.mxu3 %v231_v58 }
  0x3f   :  { %263 = vmatpush.msra.mxu3 %v230_v59 }
  0x41   :  { %264 = vmatpush.msra.mxu3 %v229_v60 }
  0x97   :  { %v137_v33 = vpop.f32.mrf.mxu0 }
  0x98   :  { %v138_v34 = vadd.f32 %v298_v32, %v137_v33 }
  0x9a   :  { %vm140_vm1 = vcmp.gt.f32.partialorder %v138_v34, 0.0  ;;  %v141_v35 = vmul.f32 0.2, %v138_v34 }
  0x9c   :  { %v142_v36 = vsel %vm140_vm1, %v138_v34, %v141_v35 }
  0x9d   :  { %179 = vmatmul.f32.vlgmr.msra.gmra.mxu1 %v142_v36 }
 0x11a   :  { %v180_v54 = vpop.f32.mrf.mxu1 }
 0x11b   :  { %v181_v55 = vadd.f32 %v299_v53, %v180_v54 }
 0x11d   :  { %vm183_vm2 = vcmp.gt.f32.partialorder %v181_v55, 0.0  ;;  %v184_v56 = vmul.f32 0.2, %v181_v55 }
 0x11f   :  { %v185_v57 = vsel %vm183_vm2, %v181_v55, %v184_v56 }
 0x120   :  { %222 = vmatmul.f32.vlgmr.msra.gmra.mxu2 %v185_v57 }
 0x1a3   :  { %v223_v62 = vpop.f32.mrf.mxu2 }
 0x1a4   :  { %v224_v63 = vadd.f32 %v300_v61, %v223_v62 }
 0x1a6   :  { %vm226_vm3 = vcmp.gt.f32.partialorder %v224_v63, 0.0  ;;  %v227_v0 = vmul.f32 0.2, %v224_v63 }
 0x1a8   :  { %v228_v1 = vsel %vm226_vm3, %v224_v63, %v227_v0 }
 0x1a9   :  { %265 = vmatmul.f32.vlgmr.msra.gmra.mxu3 %v228_v1 }
 0x22c   :  { %v266_v3 = vpop.f32.mrf.mxu3 }
 0x22d   :  { %v267_v4 = vadd.f32 %v301_v2, %v266_v3 }
 0x22f   :  { %269 = vst [vmem:[#allocation11] sm:$0xff] %v267_v4 }
 0x230   :  { %280 = dma.vmem_to_hbm [thread:$0]  %s276_s17, 128, %s278_s20, [#allocation4]  }
 0x231   :  { %452 = dma.done.wait [#allocation4], 128  }
 0x232   :  { %453 = vsyncadd [#allocation4], 4294967168 }
 0x233   :  { %285 = vsyncpa [#allocation3], 1 }
 0x234   :  { %286 = vsyncpa [#allocation6], 1 }
 0x235   :  { %287 = vsyncpa [#allocation9], 1 }
 0x236   :  { %288 = vsyncpa [#allocation4], 1 }

// kernel: tpu_custom_call.1
= control target key start
LH: loop header
LB: loop body
LE: loop exit
PB: predicated region body
PF: predicated region fallthrough
CT: control target
= control target key end

     0   :  { %14 = vsyncpa [#allocation3], 0  ;;  %s542_s0 = inlined_call_operand.hbm [shape: f32[8,16], index: 0, kind: input, shape index: {}]   ;;  %s543_s1 = inlined_call_operand.hbm [shape: f32[16,128], index: 1, kind: input, shape index: {}]   ;;  %s544_s2 = inlined_call_operand.vmem [shape: f32[1,128], index: 2, kind: input, shape index: {}]   ;;  %s545_s3 = inlined_call_operand.hbm [shape: f32[128,128], index: 3, kind: input, shape index: {}]   ;;  %s546_s4 = inlined_call_operand.vmem [shape: f32[1,128], index: 4, kind: input, shape index: {}]   ;;  %s547_s5 = inlined_call_operand.hbm [shape: f32[128,128], index: 5, kind: input, shape index: {}]   ;;  %s548_s6 = inlined_call_operand.vmem [shape: f32[1,128], index: 6, kind: input, shape index: {}]   ;;  %s549_s7 = inlined_call_operand.hbm [shape: f32[128,128], index: 7, kind: input, shape index: {}]   ;;  %s550_s8 = inlined_call_operand.vmem [shape: f32[1,128], index: 8, kind: input, shape index: {}]   ;;  %s551_s9 = inlined_call_operand.hbm [shape: f32[8,128], index: 9, kind: output, shape index: {}]  }
   0x1   :  { %15 = vsyncpa [#allocation6], 0 }
   0x2   :  { %16 = vsyncpa [#allocation9], 0  ;;  %s33_s11 = sshll.u32 %s543_s1, 4  ;;  %s34_s11 = int_to_ptr.hbm [resolvable:$true] %s33_s11 }
   0x3   :  { %17 = vsyncpa [#allocation4], 0  ;;  %s454_s12 = smov [#allocation5]   ;;  %s63_s16 = sshll.u32 %s547_s5, 4  ;;  %s64_s16 = int_to_ptr.hbm [resolvable:$true] %s63_s16 }
   0x4   :  { %s35_s13 = sshll.u32 %s454_s12, 4  ;;  %s455_s17 = smov 128   ;;  %s36_s13 = int_to_ptr.vmem [resolvable:$true] %s35_s13 }
   0x5   :  { %s456_s18 = smov 8   ;;  %s457_s19 = smov [#allocation8]  }
   0x6   :  { %41 = dma.hbm_to_vmem [thread:$0]  %s34_s11, 256, %s36_s13, [#allocation6], %s455_s17, %s455_s17, %s456_s18  }
   0x7   :  { %s65_s20 = sshll.u32 %s457_s19, 4  ;;  %s23_s23 = sshll.u32 %s542_s0, 4  ;;  %s66_s20 = int_to_ptr.vmem [resolvable:$true] %s65_s20  ;;  %s24_s23 = int_to_ptr.hbm [resolvable:$true] %s23_s23 }
   0x8   :  { %71 = dma.hbm_to_vmem [thread:$0]  %s64_s16, 2048, %s66_s20, [#allocation9], %s455_s17, %s455_s17, %s456_s18  }
   0x9   :  { %s48_s25 = sshll.u32 %s545_s3, 4  ;;  %s458_s26 = smov [#allocation2]   ;;  %s49_s25 = int_to_ptr.hbm [resolvable:$true] %s48_s25 }
   0xa   :  { %s25_s27 = sshll.u32 %s458_s26, 4  ;;  %s459_s5 = smov [#allocation7]   ;;  %s26_s27 = int_to_ptr.vmem [resolvable:$true] %s25_s27 }
   0xb   :  { %28 = dma.hbm_to_vmem [thread:$0]  %s24_s23, 128, %s26_s27, [#allocation3]  }
   0xc   :  { %s50_s28 = sshll.u32 %s459_s5, 4  ;;  %s78_s10 = sshll.u32 %s549_s7, 4  ;;  %s51_s28 = int_to_ptr.vmem [resolvable:$true] %s50_s28  ;;  %s79_s10 = int_to_ptr.hbm [resolvable:$true] %s78_s10 }
   0xd   :  { %56 = dma.hbm_to_vmem [thread:$0]  %s49_s25, 2048, %s51_s28, [#allocation6], %s455_s17, %s455_s17, %s456_s18  }
   0xe   :  { %s460_s0 = smov [#allocation10]  }
   0xf   :  { %s80_s11 = sshll.u32 %s460_s0, 4  ;;  %s81_s11 = int_to_ptr.vmem [resolvable:$true] %s80_s11 }
  0x10   :  { %86 = dma.hbm_to_vmem [thread:$0]  %s79_s10, 2048, %s81_s11, [#allocation9], %s455_s17, %s455_s17, %s456_s18  }
  0x11   :  { %446 = dma.done.wait [#allocation3], 128  }
  0x12   :  { %447 = vsyncadd [#allocation3], 4294967168 }
  0x13   :  { %448 = dma.done.wait [#allocation6], 2304  }
  0x14   :  { %449 = vsyncadd [#allocation6], 4294964992 }
  0x15   :  { %450 = dma.done.wait [#allocation9], 4096  }
  0x16   :  { %451 = vsyncadd [#allocation9], 4294963200  ;;  %v111_v0 = vld [vmem:[#allocation5 + $0x8] sm:$0xff]  ;;  %v110_v1 = vld [vmem:[#allocation5] sm:$0xff]  ;;  %vm116_vm0 = vcmask 130048   ;;  %s461_s16 = smov [#allocation11]  }
  0x17   :  { %134 = vmatpush.msra.mxu0 %v111_v0  ;;  %v109_v2 = vld [vmem:[#allocation2] sm:$0xff]  ;;  %v158_v3 = vld [vmem:[#allocation7 + $0x78] sm:$0xff]  ;;  %v157_v4 = vld [vmem:[#allocation7 + $0x70] sm:$0xff]  ;;  %s275_s17 = sshll.u32 %s461_s16, 4  ;;  %s277_s20 = sshll.u32 %s551_s9, 4  ;;  %s276_s17 = int_to_ptr.vmem [resolvable:$true] %s275_s17  ;;  %s278_s20 = int_to_ptr.hbm [resolvable:$true] %s277_s20 }
  0x18   :  { %163 = vmatpush.msra.mxu1 %v158_v3  ;;  %v156_v5 = vld [vmem:[#allocation7 + $0x68] sm:$0xff]  ;;  %v155_v6 = vld [vmem:[#allocation7 + $0x60] sm:$0xff]  ;;  %v154_v7 = vld [vmem:[#allocation7 + $0x58] sm:$0xff] }
  0x19   :  { %135 = vmatpush.msra.mxu0 %v110_v1  ;;  %v153_v8 = vld [vmem:[#allocation7 + $0x50] sm:$0xff]  ;;  %v152_v9 = vld [vmem:[#allocation7 + $0x48] sm:$0xff]  ;;  %v151_v10 = vld [vmem:[#allocation7 + $0x40] sm:$0xff] }
  0x1a   :  { %289 = vmatmul.msk.f32.vlgmr.msra.gmra.mxu0 %vm116_vm0, %v109_v2  ;;  %164 = vmatpush.msra.mxu1 %v157_v4  ;;  %v150_v11 = vld [vmem:[#allocation7 + $0x38] sm:$0xff]  ;;  %v149_v12 = vld [vmem:[#allocation7 + $0x30] sm:$0xff]  ;;  %v148_v13 = vld [vmem:[#allocation7 + $0x28] sm:$0xff] }
  0x1b   :  { %v147_v14 = vld [vmem:[#allocation7 + $0x20] sm:$0xff]  ;;  %v146_v15 = vld [vmem:[#allocation7 + $0x18] sm:$0xff]  ;;  %v145_v16 = vld [vmem:[#allocation7 + $0x10] sm:$0xff] }
  0x1c   :  { %165 = vmatpush.msra.mxu1 %v156_v5  ;;  %v144_v17 = vld [vmem:[#allocation7 + $0x8] sm:$0xff]  ;;  %v143_v18 = vld [vmem:[#allocation7] sm:$0xff]  ;;  %v201_v19 = vld [vmem:[#allocation8 + $0x78] sm:$0xff] }
  0x1d   :  { %v200_v20 = vld [vmem:[#allocation8 + $0x70] sm:$0xff]  ;;  %206 = vmatpush.msra.mxu2 %v201_v19  ;;  %v199_v21 = vld [vmem:[#allocation8 + $0x68] sm:$0xff]  ;;  %v198_v22 = vld [vmem:[#allocation8 + $0x60] sm:$0xff] }
  0x1e   :  { %166 = vmatpush.msra.mxu1 %v155_v6  ;;  %v197_v23 = vld [vmem:[#allocation8 + $0x58] sm:$0xff]  ;;  %v196_v24 = vld [vmem:[#allocation8 + $0x50] sm:$0xff]  ;;  %v195_v25 = vld [vmem:[#allocation8 + $0x48] sm:$0xff] }
  0x1f   :  { %207 = vmatpush.msra.mxu2 %v200_v20  ;;  %v194_v26 = vld [vmem:[#allocation8 + $0x40] sm:$0xff]  ;;  %v193_v27 = vld [vmem:[#allocation8 + $0x38] sm:$0xff]  ;;  %v192_v28 = vld [vmem:[#allocation8 + $0x30] sm:$0xff] }
  0x20   :  { %167 = vmatpush.msra.mxu1 %v154_v7  ;;  %v191_v29 = vld [vmem:[#allocation8 + $0x28] sm:$0xff]  ;;  %v190_v30 = vld [vmem:[#allocation8 + $0x20] sm:$0xff]  ;;  %v189_v31 = vld [vmem:[#allocation8 + $0x18] sm:$0xff] }
  0x21   :  { %208 = vmatpush.msra.mxu2 %v199_v21  ;;  %v298_v32 = vld [vmem:[%s544_s2] ss:$0 sm:$0xff]  ;;  %v188_v37 = vld [vmem:[#allocation8 + $0x10] sm:$0xff]  ;;  %v186_v39 = vld [vmem:[#allocation8] sm:$0xff] }
  0x22   :  { %168 = vmatpush.msra.mxu1 %v153_v8  ;;  %v187_v38 = vld [vmem:[#allocation8 + $0x8] sm:$0xff]  ;;  %v244_v40 = vld [vmem:[#allocation10 + $0x78] sm:$0xff]  ;;  %v243_v41 = vld [vmem:[#allocation10 + $0x70] sm:$0xff] }
  0x23   :  { %209 = vmatpush.msra.mxu2 %v198_v22  ;;  %249 = vmatpush.msra.mxu3 %v244_v40  ;;  %v242_v42 = vld [vmem:[#allocation10 + $0x68] sm:$0xff]  ;;  %v241_v43 = vld [vmem:[#allocation10 + $0x60] sm:$0xff]  ;;  %v240_v44 = vld [vmem:[#allocation10 + $0x58] sm:$0xff] }
  0x24   :  { %169 = vmatpush.msra.mxu1 %v152_v9  ;;  %v239_v45 = vld [vmem:[#allocation10 + $0x50] sm:$0xff]  ;;  %v238_v46 = vld [vmem:[#allocation10 + $0x48] sm:$0xff]  ;;  %v237_v47 = vld [vmem:[#allocation10 + $0x40] sm:$0xff] }
  0x25   :  { %210 = vmatpush.msra.mxu2 %v197_v23  ;;  %250 = vmatpush.msra.mxu3 %v243_v41  ;;  %v236_v48 = vld [vmem:[#allocation10 + $0x38] sm:$0xff]  ;;  %v235_v49 = vld [vmem:[#allocation10 + $0x30] sm:$0xff]  ;;  %v234_v50 = vld [vmem:[#allocation10 + $0x28] sm:$0xff] }
  0x26   :  { %170 = vmatpush.msra.mxu1 %v151_v10  ;;  %v233_v51 = vld [vmem:[#allocation10 + $0x20] sm:$0xff]  ;;  %v232_v52 = vld [vmem:[#allocation10 + $0x18] sm:$0xff]  ;;  %v299_v53 = vld [vmem:[%s546_s4] ss:$0 sm:$0xff] }
  0x27   :  { %211 = vmatpush.msra.mxu2 %v196_v24  ;;  %251 = vmatpush.msra.mxu3 %v242_v42  ;;  %v231_v58 = vld [vmem:[#allocation10 + $0x10] sm:$0xff]  ;;  %v230_v59 = vld [vmem:[#allocation10 + $0x8] sm:$0xff]  ;;  %v229_v60 = vld [vmem:[#allocation10] sm:$0xff] }
  0x28   :  { %171 = vmatpush.msra.mxu1 %v150_v11  ;;  %v300_v61 = vld [vmem:[%s548_s6] ss:$0 sm:$0xff] }
  0x29   :  { %212 = vmatpush.msra.mxu2 %v195_v25  ;;  %252 = vmatpush.msra.mxu3 %v241_v43  ;;  %v301_v2 = vld [vmem:[%s550_s8] ss:$0 sm:$0xff] }
  0x2a   :  { %172 = vmatpush.msra.mxu1 %v149_v12 }
  0x2b   :  { %213 = vmatpush.msra.mxu2 %v194_v26  ;;  %253 = vmatpush.msra.mxu3 %v240_v44 }
  0x2c   :  { %173 = vmatpush.msra.mxu1 %v148_v13 }
  0x2d   :  { %214 = vmatpush.msra.mxu2 %v193_v27  ;;  %254 = vmatpush.msra.mxu3 %v239_v45 }
  0x2e   :  { %174 = vmatpush.msra.mxu1 %v147_v14 }
  0x2f   :  { %215 = vmatpush.msra.mxu2 %v192_v28  ;;  %255 = vmatpush.msra.mxu3 %v238_v46 }
  0x30   :  { %175 = vmatpush.msra.mxu1 %v146_v15 }
  0x31   :  { %216 = vmatpush.msra.mxu2 %v191_v29  ;;  %256 = vmatpush.msra.mxu3 %v237_v47 }
  0x32   :  { %176 = vmatpush.msra.mxu1 %v145_v16 }
  0x33   :  { %217 = vmatpush.msra.mxu2 %v190_v30  ;;  %257 = vmatpush.msra.mxu3 %v236_v48 }
  0x34   :  { %177 = vmatpush.msra.mxu1 %v144_v17 }
  0x35   :  { %218 = vmatpush.msra.mxu2 %v189_v31  ;;  %258 = vmatpush.msra.mxu3 %v235_v49 }
  0x36   :  { %178 = vmatpush.msra.mxu1 %v143_v18 }
  0x37   :  { %219 = vmatpush.msra.mxu2 %v188_v37  ;;  %259 = vmatpush.msra.mxu3 %v234_v50 }
  0x39   :  { %220 = vmatpush.msra.mxu2 %v187_v38  ;;  %260 = vmatpush.msra.mxu3 %v233_v51 }
  0x3b   :  { %221 = vmatpush.msra.mxu2 %v186_v39  ;;  %261 = vmatpush.msra.mxu3 %v232_v52 }
  0x3d   :  { %262 = vmatpush.msra.mxu3 %v231_v58 }
  0x3f   :  { %263 = vmatpush.msra.mxu3 %v230_v59 }
  0x41   :  { %264 = vmatpush.msra.mxu3 %v229_v60 }
  0x97   :  { %v137_v33 = vpop.f32.mrf.mxu0 }
  0x98   :  { %v138_v34 = vadd.f32 %v298_v32, %v137_v33 }
  0x9a   :  { %vm140_vm1 = vcmp.gt.f32.partialorder %v138_v34, 0.0  ;;  %v141_v35 = vmul.f32 0.2, %v138_v34 }
  0x9c   :  { %v142_v36 = vsel %vm140_vm1, %v138_v34, %v141_v35 }
  0x9d   :  { %179 = vmatmul.f32.vlgmr.msra.gmra.mxu1 %v142_v36 }
 0x11a   :  { %v180_v54 = vpop.f32.mrf.mxu1 }
 0x11b   :  { %v181_v55 = vadd.f32 %v299_v53, %v180_v54 }
 0x11d   :  { %vm183_vm2 = vcmp.gt.f32.partialorder %v181_v55, 0.0  ;;  %v184_v56 = vmul.f32 0.2, %v181_v55 }
 0x11f   :  { %v185_v57 = vsel %vm183_vm2, %v181_v55, %v184_v56 }
 0x120   :  { %222 = vmatmul.f32.vlgmr.msra.gmra.mxu2 %v185_v57 }
 0x1a3   :  { %v223_v62 = vpop.f32.mrf.mxu2 }
 0x1a4   :  { %v224_v63 = vadd.f32 %v300_v61, %v223_v62 }
 0x1a6   :  { %vm226_vm3 = vcmp.gt.f32.partialorder %v224_v63, 0.0  ;;  %v227_v0 = vmul.f32 0.2, %v224_v63 }
 0x1a8   :  { %v228_v1 = vsel %vm226_vm3, %v224_v63, %v227_v0 }
 0x1a9   :  { %265 = vmatmul.f32.vlgmr.msra.gmra.mxu3 %v228_v1 }
 0x22c   :  { %v266_v3 = vpop.f32.mrf.mxu3 }
 0x22d   :  { %v267_v4 = vadd.f32 %v301_v2, %v266_v3 }
 0x22f   :  { %269 = vst [vmem:[#allocation11] sm:$0xff] %v267_v4 }
 0x230   :  { %280 = dma.vmem_to_hbm [thread:$0]  %s276_s17, 128, %s278_s20, [#allocation4]  }
 0x231   :  { %452 = dma.done.wait [#allocation4], 128  }
 0x232   :  { %453 = vsyncadd [#allocation4], 4294967168 }
 0x233   :  { %285 = vsyncpa [#allocation3], 1 }
 0x234   :  { %286 = vsyncpa [#allocation6], 1 }
 0x235   :  { %287 = vsyncpa [#allocation9], 1 }
 0x236   :  { %288 = vsyncpa [#allocation4], 1 }

</bundles_post_ra>
